<compile_context>
chip_gen: v7x
topology: tpu7x:2x2x1
jax: 0.10.0
libtpu: 0.0.40
codegen_flags: <defaults>
</compile_context>

<pallas_src>
import functools

import jax
import jax.numpy as jnp
from jax import lax
from jax.experimental import pallas as pl
from jax.experimental.pallas import tpu as pltpu

_LANE = 128
_SUBLANE = 8
_MAX_BLOCK_ROWS = 4096        # (4096, 128) f32 tile = 2 MiB per pipeline buffer
_MIN_KERNEL_ELEMS = 1 << 17   # below this, the pure-JAX path wins on launch cost
_MIN_BLOCKS_FOR_SPLIT = 4     # only split across 2 cores when there is real work


def _cdiv(a, b):
    return -(-a // b)


def _round_up(a, b):
    return _cdiv(a, b) * b


def _softplus_neg(x):
    # BCE-with-logits, target = 1.0:  softplus(-x), numerically stable.
    return jnp.maximum(x, 0.0) - x + jnp.log1p(jnp.exp(-jnp.abs(x)))


def _gen_bce_kernel(rows, blocks_per_core, block_rows, x_ref, out_ref):
    """One (block_rows, 128) tile -> (1, 8, 128) partial-sum accumulator."""
    c = pl.program_id(0)            # core split (parallel axis)
    j = pl.program_id(1)            # block within this core (reduction axis)

    @pl.when(j == 0)
    def _init():
        out_ref[...] = jnp.zeros_like(out_ref)

    blk = c * blocks_per_core + j
    row0 = blk * block_rows

    def accumulate(loss):
        # Reduce only over the row-tile axis; keep the accumulator vreg-shaped
        # (8, 128) so per-step work stays in the VALU slot.  The cross-lane
        # reduction happens once in the tiny JAX epilogue.
        partial = loss.reshape(block_rows // _SUBLANE, _SUBLANE, _LANE).sum(axis=0)
        out_ref[...] += partial[None]

    # A block is "interior" iff every one of its rows holds valid data.  Clamped
    # duplicate blocks (blk beyond the real block count) have row0 >= rows and
    # take the masked branch, where the mask zeroes them entirely.
    is_full = (row0 + block_rows) <= rows

    @pl.when(is_full)
    def _fast():
        x = x_ref[...].astype(jnp.float32)      # native-dtype DMA, widen on VPU
        accumulate(_softplus_neg(x))

    @pl.when(jnp.logical_not(is_full))
    def _boundary():
        x = x_ref[...].astype(jnp.float32)
        rid = lax.broadcasted_iota(jnp.int32, x.shape, 0)
        mask = (row0 + rid) < rows              # row-only compare: cheap, no overflow
        xs = jnp.where(mask, x, 0.0)            # keep garbage out of the EUP
        loss = jnp.where(mask, _softplus_neg(xs), 0.0)
        accumulate(loss)


def generator_loss_bce_logits(d_gen, *, block_rows=None,
                              min_kernel_elems=_MIN_KERNEL_ELEMS):
    n = int(d_gen.size)
    flat = jnp.ravel(d_gen)                     # free for contiguous arrays; no cast
    rows = n // _LANE

    # Small inputs (or <1 full row): pure-JAX fused path beats launch overhead.
    if rows == 0 or n < min_kernel_elems:
        return jnp.mean(_softplus_neg(flat.astype(jnp.float32)))

    tail = n - rows * _LANE
    main = flat if tail == 0 else lax.slice(flat, (0,), (rows * _LANE,))
    x2d = main.reshape(rows, _LANE)

    # Round the row-tile to the packed sublane multiple of the native dtype.
    itemsize = jnp.dtype(x2d.dtype).itemsize
    sublane_mult = _SUBLANE * max(1, 4 // max(1, itemsize))   # 8 / 16 / 32
    if block_rows is None:
        block_rows = min(_MAX_BLOCK_ROWS, _round_up(rows, sublane_mult))
    block_rows = _round_up(int(block_rows), sublane_mult)

    total_blocks = _cdiv(rows, block_rows)
    num_cores = 2 if total_blocks >= _MIN_BLOCKS_FOR_SPLIT else 1
    blocks_per_core = _cdiv(total_blocks, num_cores)

    def x_index_map(c, j):
        blk = c * blocks_per_core + j
        # Clamp out-of-range blocks (tail of core 1's share) onto the last real
        # block; their contribution is zeroed by the in-kernel row mask.
        return (jnp.minimum(blk, total_blocks - 1), 0)

    kernel = functools.partial(
        _gen_bce_kernel, int(rows), int(blocks_per_core), int(block_rows))

    partials = pl.pallas_call(
        kernel,
        out_shape=jax.ShapeDtypeStruct((num_cores, _SUBLANE, _LANE),
                                       jnp.float32),
        grid=(num_cores, int(blocks_per_core)),
        in_specs=[pl.BlockSpec((int(block_rows), _LANE), x_index_map)],
        out_specs=pl.BlockSpec((1, _SUBLANE, _LANE), lambda c, j: (c, 0, 0)),
        compiler_params=pltpu.CompilerParams(
            dimension_semantics=("parallel", "arbitrary")),
    )(x2d)

    # Tiny epilogue: combine per-core (8,128) partials, add the <128-elem tail
    # (computed in plain JAX — no full-array pad copy), then normalize.
    total = jnp.sum(partials)
    if tail:
        t = lax.slice(flat, (rows * _LANE,), (n,)).astype(jnp.float32)
        total = total + jnp.sum(_softplus_neg(t))
    return total / n


def _reference(d_gen):
    x = jnp.ravel(d_gen).astype(jnp.float32)
    return jnp.mean(_softplus_neg(x))


if __name__ == "__main__":
    key = jax.random.PRNGKey(0)
    k1, k2, k3, k4 = jax.random.split(key, 4)

    # 1) Canonical small discriminator-logit tensor (NCHW), kernel path forced.
    d_gen = jax.random.normal(k1, (2, 4, 16, 16), dtype=jnp.float32)
    loss = generator_loss_bce_logits(d_gen, min_kernel_elems=0)
    jax.block_until_ready(loss)
    assert jnp.allclose(loss, _reference(d_gen), rtol=1e-5, atol=1e-5), loss

    # 2) Ragged element count + tiny block_rows: exercises the <128-elem tail,
    #    the partially-valid boundary block, and the clamped 2-core split.
    d_rag = jax.random.normal(k2, (2, 3, 37, 41), dtype=jnp.float32)  # 9102 elems
    loss2 = generator_loss_bce_logits(d_rag, block_rows=16, min_kernel_elems=0)
    jax.block_until_ready(loss2)
    assert jnp.allclose(loss2, _reference(d_rag), rtol=1e-5, atol=1e-5), loss2

    # 3) bf16 logits: native-dtype DMA, sublane multiple of 16.
    d_bf16 = jax.random.normal(k3, (4, 8, 32, 32), dtype=jnp.bfloat16)
    loss3 = generator_loss_bce_logits(d_bf16, min_kernel_elems=0)
    jax.block_until_ready(loss3)
    assert jnp.allclose(loss3, _reference(d_bf16), rtol=1e-4, atol=1e-4), loss3

    # 4) Sub-row ragged input and default small-input fast path (pure JAX).
    d_tiny = jax.random.normal(k4, (3, 5, 7), dtype=jnp.float32)
    loss4 = generator_loss_bce_logits(d_tiny)
    jax.block_until_ready(loss4)
    assert jnp.allclose(loss4, _reference(d_tiny), rtol=1e-5, atol=1e-5), loss4

    print("KERNEL_OK")
</pallas_src>

<mosaic_0001>
module attributes {stable_mosaic.version = 11 : i64} {
  func.func @_gen_bce_kernel(%arg0: i32, %arg1: i32, %arg2: memref<16x128xf32, #tpu.memory_space<vmem>>, %arg3: memref<1x8x128xf32, #tpu.memory_space<vmem>>) attributes {dimension_semantics = [#tpu.dimension_semantics<parallel>, #tpu.dimension_semantics<arbitrary>], iteration_bounds = array<i64: 1, 1>, scalar_prefetch = 0 : i64, scratch_operands = 0 : i64, tpu.core_type = #tpu.core_type<tc>, window_params = [{transform_indices = @transform_0, window_bounds = array<i64: 16, 128>}, {transform_indices = @transform_1, window_bounds = array<i64: 1, 8, 128>}]} {
    %c0_i32 = arith.constant 0 : i32
    %0 = arith.cmpi eq, %arg1, %c0_i32 : i32
    %1 = arith.extui %0 : i1 to i32
    %c0_i32_0 = arith.constant 0 : i32
    %2 = arith.cmpi ne, %1, %c0_i32_0 : i32
    scf.if %2 {
      %cst = arith.constant 0.000000e+00 : f32
      %13 = vector.broadcast %cst : f32 to vector<1x8x128xf32>
      %c0 = arith.constant 0 : index
      %c0_5 = arith.constant 0 : index
      %c0_6 = arith.constant 0 : index
      %14 = vector.load %arg3[%c0, %c0_5, %c0_6] : memref<1x8x128xf32, #tpu.memory_space<vmem>>, vector<1x8x128xf32>
      tpu.vector_store %arg3[%c0, %c0_5, %c0_6], %13 {strides = array<i32>} : memref<1x8x128xf32, #tpu.memory_space<vmem>>, vector<1x8x128xf32>,
    } else {
    }
    %c1_i32 = arith.constant 1 : i32
    %3 = arith.muli %arg0, %c1_i32 : i32
    %4 = arith.addi %3, %arg1 : i32
    %c16_i32 = arith.constant 16 : i32
    %5 = arith.muli %4, %c16_i32 : i32
    %c16_i32_1 = arith.constant 16 : i32
    %6 = arith.addi %5, %c16_i32_1 : i32
    %c16_i32_2 = arith.constant 16 : i32
    %7 = arith.cmpi sle, %6, %c16_i32_2 : i32
    %8 = arith.extui %7 : i1 to i32
    %c0_i32_3 = arith.constant 0 : i32
    %9 = arith.cmpi ne, %8, %c0_i32_3 : i32
    scf.if %9 {
      %c0 = arith.constant 0 : index
      %c0_5 = arith.constant 0 : index
      %13 = vector.load %arg2[%c0, %c0_5] : memref<16x128xf32, #tpu.memory_space<vmem>>, vector<16x128xf32>
      %cst = arith.constant 0.000000e+00 : f32
      %14 = vector.broadcast %cst : f32 to vector<16x128xf32>
      %15 = arith.maximumf %13, %14 : vector<16x128xf32>
      %16 = arith.subf %15, %13 : vector<16x128xf32>
      %17 = math.absf %13 : vector<16x128xf32>
      %cst_6 = arith.constant 0.000000e+00 : f32
      %18 = vector.broadcast %cst_6 : f32 to vector<16x128xf32>
      %19 = arith.subf %18, %17 : vector<16x128xf32>
      %20 = math.exp %19 : vector<16x128xf32>
      %21 = math.log1p %20 : vector<16x128xf32>
      %22 = arith.addf %16, %21 : vector<16x128xf32>
      %23 = vector.shape_cast %22 : vector<16x128xf32> to vector<2x8x128xf32>
      %cst_7 = arith.constant dense<0.000000e+00> : vector<8x128xf32>
      %24 = vector.multi_reduction <add>, %23, %cst_7 [0] : vector<2x8x128xf32> to vector<8x128xf32>
      %c0_8 = arith.constant 0 : index
      %c0_9 = arith.constant 0 : index
      %c0_10 = arith.constant 0 : index
      %25 = vector.load %arg3[%c0_8, %c0_9, %c0_10] : memref<1x8x128xf32, #tpu.memory_space<vmem>>, vector<1x8x128xf32>
      %26 = vector.shape_cast %24 : vector<8x128xf32> to vector<1x8x128xf32>
      %27 = arith.addf %25, %26 : vector<1x8x128xf32>
      %c0_11 = arith.constant 0 : index
      %c0_12 = arith.constant 0 : index
      %c0_13 = arith.constant 0 : index
      %28 = vector.load %arg3[%c0_11, %c0_12, %c0_13] : memref<1x8x128xf32, #tpu.memory_space<vmem>>, vector<1x8x128xf32>
      tpu.vector_store %arg3[%c0_11, %c0_12, %c0_13], %27 {strides = array<i32>} : memref<1x8x128xf32, #tpu.memory_space<vmem>>, vector<1x8x128xf32>,
    } else {
    }
    %true = arith.constant true
    %10 = arith.xori %7, %true : i1
    %11 = arith.extui %10 : i1 to i32
    %c0_i32_4 = arith.constant 0 : i32
    %12 = arith.cmpi ne, %11, %c0_i32_4 : i32
    scf.if %12 {
      %c0 = arith.constant 0 : index
      %c0_5 = arith.constant 0 : index
      %13 = vector.load %arg2[%c0, %c0_5] : memref<16x128xf32, #tpu.memory_space<vmem>>, vector<16x128xf32>
      %14 = tpu.iota {dimensions = array<i32: 0>} : vector<16x128xi32>
      %15 = vector.broadcast %5 : i32 to vector<16x128xi32>
      %16 = arith.addi %15, %14 : vector<16x128xi32>
      %c16_i32_6 = arith.constant 16 : i32
      %17 = vector.broadcast %c16_i32_6 : i32 to vector<16x128xi32>
      %18 = arith.cmpi slt, %16, %17 : vector<16x128xi32>
      %cst = arith.constant 0.000000e+00 : f32
      %19 = vector.broadcast %cst : f32 to vector<16x128xf32>
      %20 = arith.select %18, %13, %19 : vector<16x128xi1>, vector<16x128xf32>
      %cst_7 = arith.constant 0.000000e+00 : f32
      %21 = vector.broadcast %cst_7 : f32 to vector<16x128xf32>
      %22 = arith.maximumf %20, %21 : vector<16x128xf32>
      %23 = arith.subf %22, %20 : vector<16x128xf32>
      %24 = math.absf %20 : vector<16x128xf32>
      %cst_8 = arith.constant 0.000000e+00 : f32
      %25 = vector.broadcast %cst_8 : f32 to vector<16x128xf32>
      %26 = arith.subf %25, %24 : vector<16x128xf32>
      %27 = math.exp %26 : vector<16x128xf32>
      %28 = math.log1p %27 : vector<16x128xf32>
      %29 = arith.addf %23, %28 : vector<16x128xf32>
      %cst_9 = arith.constant 0.000000e+00 : f32
      %30 = vector.broadcast %cst_9 : f32 to vector<16x128xf32>
      %31 = arith.select %18, %29, %30 : vector<16x128xi1>, vector<16x128xf32>
      %32 = vector.shape_cast %31 : vector<16x128xf32> to vector<2x8x128xf32>
      %cst_10 = arith.constant dense<0.000000e+00> : vector<8x128xf32>
      %33 = vector.multi_reduction <add>, %32, %cst_10 [0] : vector<2x8x128xf32> to vector<8x128xf32>
      %c0_11 = arith.constant 0 : index
      %c0_12 = arith.constant 0 : index
      %c0_13 = arith.constant 0 : index
      %34 = vector.load %arg3[%c0_11, %c0_12, %c0_13] : memref<1x8x128xf32, #tpu.memory_space<vmem>>, vector<1x8x128xf32>
      %35 = vector.shape_cast %33 : vector<8x128xf32> to vector<1x8x128xf32>
      %36 = arith.addf %34, %35 : vector<1x8x128xf32>
      %c0_14 = arith.constant 0 : index
      %c0_15 = arith.constant 0 : index
      %c0_16 = arith.constant 0 : index
      %37 = vector.load %arg3[%c0_14, %c0_15, %c0_16] : memref<1x8x128xf32, #tpu.memory_space<vmem>>, vector<1x8x128xf32>
      tpu.vector_store %arg3[%c0_14, %c0_15, %c0_16], %36 {strides = array<i32>} : memref<1x8x128xf32, #tpu.memory_space<vmem>>, vector<1x8x128xf32>,
    } else {
    }
    return
  }
  func.func @transform_0(%arg0: i32, %arg1: i32) -> (i32, i32) {
    %c1_i32 = arith.constant 1 : i32
    %0 = arith.muli %arg0, %c1_i32 : i32
    %1 = arith.addi %0, %arg1 : i32
    %c0_i32 = arith.constant 0 : i32
    %2 = arith.minsi %1, %c0_i32 : i32
    %c0_i32_0 = arith.constant 0 : i32
    %c0_i32_1 = arith.constant 0 : i32
    return %2, %c0_i32_0 : i32, i32
  }
  func.func @transform_1(%arg0: i32, %arg1: i32) -> (i32, i32, i32) {
    %c0_i32 = arith.constant 0 : i32
    %c0_i32_0 = arith.constant 0 : i32
    %c0_i32_1 = arith.constant 0 : i32
    return %arg0, %c0_i32, %c0_i32_0 : i32, i32, i32
  }
}

</mosaic_0001>

<bundles_post_ra>
// kernel: tpu_custom_call.1
= control target key start
LH: loop header
LB: loop body
LE: loop exit
PB: predicated region body
PF: predicated region fallthrough
CT: control target
= control target key end

     0   :  { %6 = vsyncpa [#allocation3], 0  ;;  %s253_s0 = inlined_call_operand.hbm [shape: f32[16,128], index: 0, kind: input, shape index: {}]   ;;  %s254_s1 = inlined_call_operand.hbm [shape: f32[1,8,128], index: 1, kind: output, shape index: {}]  }
   0x1   :  { %7 = vsyncpa [#allocation4], 0  ;;  %s215_s6 = smov [#allocation2]   ;;  %s167_s10 = scalar_lea.hbm %s253_s0, 256 }
   0x2   :  { %s19_s7 = sshll.u32 %s215_s6, 4  ;;  %p168_p0 = scmp.ne.s32.totalorder %s253_s0, %s167_s10  ;;  %s20_s7 = int_to_ptr.vmem [resolvable:$true] %s19_s7 }
   0x3   :  { %p171_p1 = scmp.lt.u32.totalorder %s167_s10, %s253_s0 }
   0x5   :  { %p173_p2 = pnand %p171_p1, %p168_p0 }
   0x7   :  { %176 = shalt.err (!%p173_p2)
}
   0x8   :  { %s177_s15 = scalar_lea.vmem %s20_s7, 256  ;;  %p182_p4 = scmp.lt.s32.totalorder %s20_s7, %s20_s7 }
   0x9   :  { %p178_p3 = scmp.ne.s32.totalorder %s20_s7, %s177_s15  ;;  %p183_p5 = scmp.lt.s32.totalorder %s177_s15, %s177_s15 }
   0xb   :  { %p184_p6 = por %p183_p5, %p182_p4 }
   0xd   :  { %p185_p7 = pnand %p184_p6, %p178_p3 }
   0xf   :  { %188 = shalt.err (!%p185_p7)
}
  0x10   :  { %s216_s16 = smov 128   ;;  %s217_s17 = smov 8  }
  0x11   :  { %25 = dma.hbm_to_vmem [thread:$0]  %s253_s0, 256, %s20_s7, [#allocation3], %s216_s16, %s216_s16, %s217_s17  }
  0x12   :  { %211 = dma.done.wait [#allocation3], 256  }
  0x13   :  { %212 = vsyncadd [#allocation3], 4294967040  ;;  %v45_v0 = vld [vmem:[#allocation2] sm:$0xff]  ;;  %v46_v1 = vld [vmem:[#allocation2 + $0x8] sm:$0xff]  ;;  %s218_s0 = smov [#allocation5]  }
  0x14   :  { %v51_v2 = vand.u32 2147483647, %v45_v0  ;;  %v52_v3 = vand.u32 2147483647, %v46_v1  ;;  %v47_v15 = vmax.f32 %v45_v0, 0.0  ;;  %v48_v18 = vmax.f32 %v46_v1, 0.0 }
  0x15   :  { %s143_s20 = sshll.u32 %s218_s0, 4  ;;  %s144_s20 = int_to_ptr.vmem [resolvable:$true] %s143_s20 }
  0x16   :  { %v53_v4 = vsub.f32 0.0, %v51_v2  ;;  %v54_v5 = vsub.f32 0.0, %v52_v3  ;;  %v49_v22 = vsub.f32 %v47_v15, %v45_v0  ;;  %v50_v25 = vsub.f32 %v48_v18, %v46_v1  ;;  %s189_s21 = scalar_lea.vmem %s144_s20, 128  ;;  %p194_p9 = scmp.lt.s32.totalorder %s144_s20, %s144_s20 }
  0x17   :  { %p190_p8 = scmp.ne.s32.totalorder %s144_s20, %s189_s21  ;;  %p195_p10 = scmp.lt.s32.totalorder %s189_s21, %s189_s21 }
  0x18   :  { %v55_v6 = vmul.f32 1.442695, %v53_v4  ;;  %v57_v7 = vmul.f32 1.442695, %v54_v5 }
  0x19   :  { %p196_p11 = por %p195_p10, %p194_p9 }
  0x1a   :  { %159 = vpow2.f32 %v55_v6 }
  0x1b   :  { %161 = vpow2.f32 %v57_v7  ;;  %p197_p12 = pnand %p196_p11, %p190_p8 }
  0x24   :  { %v160_v8 = vpop.eup %159 }
  0x25   :  { %v162_v9 = vpop.eup %161  ;;  %v59_v10 = vadd.f32 1.0, %v160_v8  ;;  %v62_v12 = vmul.f32 -0.5, %v160_v8  ;;  %v65_v16 = vand.u32 2147483647, %v160_v8 }
  0x26   :  { %v68_v11 = vadd.f32 1.0, %v162_v9  ;;  %v71_v13 = vmul.f32 -0.5, %v162_v9  ;;  %v74_v19 = vand.u32 2147483647, %v162_v9 }
  0x27   :  { %163 = vlog2.f32 %v59_v10  ;;  %v63_v14 = vadd.f32 1.0, %v62_v12  ;;  %vm66_vm0 = vcmp.lt.f32.partialorder %v65_v16, 0.0004427343 }
  0x28   :  { %165 = vlog2.f32 %v68_v11  ;;  %v72_v17 = vadd.f32 1.0, %v71_v13  ;;  %vm75_vm1 = vcmp.lt.f32.partialorder %v74_v19, 0.0004427343 }
  0x29   :  { %v64_v20 = vmul.f32 %v160_v8, %v63_v14 }
  0x2a   :  { %v73_v23 = vmul.f32 %v162_v9, %v72_v17 }
  0x31   :  { %v164_v21 = vpop.eup %163 }
  0x32   :  { %v166_v24 = vpop.eup %165  ;;  %v61_v26 = vmul.f32 0.6931472, %v164_v21 }
  0x33   :  { %v70_v27 = vmul.f32 0.6931472, %v166_v24 }
  0x34   :  { %v67_v28 = vsel %vm66_vm0, %v64_v20, %v61_v26 }
  0x35   :  { %v76_v29 = vsel %vm75_vm1, %v73_v23, %v70_v27  ;;  %v77_v30 = vadd.f32 %v67_v28, %v49_v22 }
  0x36   :  { %v78_v31 = vadd.f32 %v76_v29, %v50_v25 }
  0x38   :  { %v79_v32 = vadd.f32 %v78_v31, %v77_v30 }
  0x3a   :  { %82 = vst [vmem:[#allocation5] sm:$0xff] %v79_v32 }
  0x3b   :  { %200 = shalt.err (!%p197_p12)
}
  0x3c   :  { %s201_s24 = scalar_lea.hbm %s254_s1, 128 }
  0x3d   :  { %p202_p13 = scmp.ne.s32.totalorder %s254_s1, %s201_s24  ;;  %p205_p0 = scmp.lt.u32.totalorder %s201_s24, %s254_s1 }
  0x3f   :  { %p207_p1 = pnand %p205_p0, %p202_p13 }
  0x41   :  { %210 = shalt.err (!%p207_p1)
}
  0x42   :  { %146 = dma.vmem_to_hbm [thread:$0]  %s144_s20, 128, %s254_s1, [#allocation4]  }
  0x43   :  { %213 = dma.done.wait [#allocation4], 128  }
  0x44   :  { %214 = vsyncadd [#allocation4], 4294967168 }
  0x45   :  { %150 = vsyncpa [#allocation3], 1 }
  0x46   :  { %151 = vsyncpa [#allocation4], 1 }

</bundles_post_ra>
